<compile_context>
chip_gen: v5e
topology: v5e:2x2
jax: 0.10.0
libtpu: 0.0.40
codegen_flags: <defaults>
</compile_context>

<pallas_src>
import functools

import jax
import jax.numpy as jnp
from jax.experimental import pallas as pl
from jax.experimental.pallas import tpu as pltpu

EPS = 1e-5


def _round_up(x, m):
    return ((x + m - 1) // m) * m


def _vmem_budget_bytes():
    """Generation-aware VMEM budget (~75% of physical capacity)."""
    cap = 64 << 20  # conservative default (v7x per-TensorCore VMEM)
    try:
        info = pltpu.get_tpu_info()
        cap = int(getattr(info, "vmem_capacity_bytes", cap))
    except Exception:
        pass
    return (cap * 3) // 4


def _pick_divisor_tile(dim, unit, cap):
    """Largest multiple of `unit` that divides `dim` and is <= cap.
    Falls back to the full extent (always a legal block shape)."""
    if dim <= cap:
        return dim
    t = (cap // unit) * unit
    while t >= unit:
        if dim % t == 0:
            return t
        t -= unit
    return dim


def _pick_row_tile(rows, unit, cap):
    """Row tile: multiple of the packed-sublane unit and, when possible, small
    enough that the (parallel) row axis has >= 2 blocks (v7x megacore)."""
    eff_cap = min(cap, rows)
    if rows >= 2 * unit:
        eff_cap = min(eff_cap, max(unit, ((rows // 2) // unit) * unit))
    t = (eff_cap // unit) * unit
    while t >= unit:
        if rows % t == 0:
            return t
        t -= unit
    return rows  # full extent is always a legal block


# ---------------- Fused single-pass kernel (whole tensor resident) ----------
def _fused_bn_relu_kernel(x_ref, g_ref, b_ref, o_ref, *, m, eps):
    x = x_ref[...].astype(jnp.float32)                          # (n, c, hw)
    # reduce lane axis first (XLU), then the leading batch axis (plain adds)
    s = jnp.sum(jnp.sum(x, axis=2, keepdims=True), axis=0, keepdims=True)
    ss = jnp.sum(jnp.sum(x * x, axis=2, keepdims=True), axis=0, keepdims=True)
    mean = s / m                                                # (1, c, 1)
    var = jnp.maximum(ss / m - mean * mean, 0.0)                # clamp: no NaN
    inv_std = jax.lax.rsqrt(var + eps)
    scale = g_ref[...] * inv_std                                # (1, c, 1)
    shift = b_ref[...] - mean * scale
    y = x * scale + shift                                       # broadcast
    o_ref[...] = jnp.maximum(y, 0.0).astype(o_ref.dtype)


# ---------------- Tiled pass 1: per-row sum / sum-of-squares (f32 acc) ------
def _stats_kernel(x_ref, sum_ref, sumsq_ref):
    k = pl.program_id(1)  # lane-tile (reduction) axis

    @pl.when(k == 0)
    def _():
        sum_ref[...] = jnp.zeros_like(sum_ref)
        sumsq_ref[...] = jnp.zeros_like(sumsq_ref)

    x = x_ref[...].astype(jnp.float32)
    sum_ref[...] += jnp.sum(x, axis=1, keepdims=True)
    sumsq_ref[...] += jnp.sum(x * x, axis=1, keepdims=True)


# ---------------- Tiled pass 2: y = relu(x * scale + shift) -----------------
def _apply_kernel(x_ref, scale_ref, shift_ref, o_ref):
    x = x_ref[...].astype(jnp.float32)
    y = x * scale_ref[...] + shift_ref[...]          # (t_r,1) broadcasts over lanes
    o_ref[...] = jnp.maximum(y, 0.0).astype(o_ref.dtype)


def activation_forward(x_nchw, gamma, beta, eps=EPS):
    """BatchNorm2d (batch statistics) + ReLU. x_nchw: (N, C, H, W), float dtype."""
    n, c, h, w = x_nchw.shape
    hw = h * w
    rows = n * c
    dtype = x_nchw.dtype
    itemsize = jnp.dtype(dtype).itemsize
    sub_unit = {4: 8, 2: 16, 1: 32}.get(itemsize, 8)
    budget = _vmem_budget_bytes()
    m = float(n * hw)

    gamma32 = gamma.astype(jnp.float32)
    beta32 = beta.astype(jnp.float32)

    # ---------------- fused fast path: 1 read + 1 write of x ----------------
    # Factor 6 leaves headroom for in/out buffers + f32 temporaries in VMEM.
    if rows * hw * 4 * 6 <= budget:
        x3d = x_nchw.reshape(n, c, hw)
        out3d = pl.pallas_call(
            functools.partial(_fused_bn_relu_kernel, m=m, eps=eps),
            out_shape=jax.ShapeDtypeStruct((n, c, hw), dtype),
            grid=(1,),
            in_specs=[
                pl.BlockSpec((n, c, hw), lambda i: (0, 0, 0)),
                pl.BlockSpec((1, c, 1), lambda i: (0, 0, 0)),
                pl.BlockSpec((1, c, 1), lambda i: (0, 0, 0)),
            ],
            out_specs=pl.BlockSpec((n, c, hw), lambda i: (0, 0, 0)),
            compiler_params=pltpu.CompilerParams(
                dimension_semantics=("arbitrary",),
                vmem_limit_bytes=int(budget)),
            cost_estimate=pl.CostEstimate(
                flops=7 * n * c * hw, transcendentals=c,
                bytes_accessed=2 * n * c * hw * itemsize),
        )(x3d, gamma32.reshape(1, c, 1), beta32.reshape(1, c, 1))
        return out3d.reshape(n, c, h, w)

    # ---------------- tiled two-pass path ------------------------------------
    # Pad the lane (H*W) axis to a multiple of 128: blocks stay lane-dense
    # (unmasked vst) and bounded; zero padding does not perturb sum/sum-of-sq
    # (we divide by the true element count) and padded lanes are sliced off.
    hw_p = _round_up(hw, 128)
    x2d = x_nchw.reshape(rows, hw)
    if hw_p != hw:
        x2d = jnp.pad(x2d, ((0, 0), (0, hw_p - hw)))

    t_r = _pick_row_tile(rows, sub_unit, 512)
    lane_cap = max(128, min(4096, ((budget // 6) // max(t_r * itemsize, 1)) // 128 * 128))
    t_c = _pick_divisor_tile(hw_p, 128, lane_cap)
    grid_r = rows // t_r
    grid_c = hw_p // t_c

    # ---- pass 1: per-row partial statistics (reduce over lane tiles) ----
    row_sum, row_sumsq = pl.pallas_call(
        _stats_kernel,
        out_shape=(
            jax.ShapeDtypeStruct((rows, 1), jnp.float32),
            jax.ShapeDtypeStruct((rows, 1), jnp.float32),
        ),
        grid=(grid_r, grid_c),
        in_specs=[pl.BlockSpec((t_r, t_c), lambda i, k: (i, k))],
        out_specs=(
            pl.BlockSpec((t_r, 1), lambda i, k: (i, 0)),
            pl.BlockSpec((t_r, 1), lambda i, k: (i, 0)),
        ),
        compiler_params=pltpu.CompilerParams(
            dimension_semantics=("parallel", "arbitrary"),
            vmem_limit_bytes=int(budget)),
        cost_estimate=pl.CostEstimate(
            flops=3 * rows * hw_p, transcendentals=0,
            bytes_accessed=rows * hw_p * itemsize + 2 * rows * 4),
    )(x2d)

    # ---- fold BN into a per-channel affine (tiny C / N*C sized arrays) ----
    mf = jnp.float32(n * hw)
    sum_c = jnp.sum(row_sum.reshape(n, c), axis=0)
    sumsq_c = jnp.sum(row_sumsq.reshape(n, c), axis=0)
    mean = sum_c / mf
    var = jnp.maximum(sumsq_c / mf - mean * mean, 0.0)   # biased var, clamped
    inv_std = jax.lax.rsqrt(var + eps)
    scale = gamma32 * inv_std
    shift = beta32 - mean * scale
    scale_rows = jnp.tile(scale, n).reshape(rows, 1)     # row r -> channel r % C
    shift_rows = jnp.tile(shift, n).reshape(rows, 1)

    # ---- pass 2: normalize + ReLU (lane-dense stores) ----
    out2d = pl.pallas_call(
        _apply_kernel,
        out_shape=jax.ShapeDtypeStruct((rows, hw_p), dtype),
        grid=(grid_r, grid_c),
        in_specs=[
            pl.BlockSpec((t_r, t_c), lambda i, j: (i, j)),
            pl.BlockSpec((t_r, 1), lambda i, j: (i, 0)),
            pl.BlockSpec((t_r, 1), lambda i, j: (i, 0)),
        ],
        out_specs=pl.BlockSpec((t_r, t_c), lambda i, j: (i, j)),
        compiler_params=pltpu.CompilerParams(
            dimension_semantics=("parallel", "parallel"),
            vmem_limit_bytes=int(budget)),
        cost_estimate=pl.CostEstimate(
            flops=3 * rows * hw_p, transcendentals=0,
            bytes_accessed=2 * rows * hw_p * itemsize + 2 * rows * 4),
    )(x2d, scale_rows, shift_rows)

    if hw_p != hw:
        out2d = out2d[:, :hw]
    return out2d.reshape(n, c, h, w)


def reference_forward(x_nchw, gamma, beta, eps=EPS):
    """Pure-JAX reference of BatchNorm2d(training) + ReLU."""
    x = x_nchw.astype(jnp.float32)
    mean = jnp.mean(x, axis=(0, 2, 3), keepdims=True)
    var = jnp.mean((x - mean) ** 2, axis=(0, 2, 3), keepdims=True)
    y = (x - mean) * jax.lax.rsqrt(var + eps)
    y = y * gamma.reshape(1, -1, 1, 1) + beta.reshape(1, -1, 1, 1)
    return jnp.maximum(y, 0.0).astype(x_nchw.dtype)


if __name__ == "__main__":
    key = jax.random.PRNGKey(0)
    N, C, H, W = 2, 4, 16, 16

    x = jax.random.normal(key, (N, C, H, W), dtype=jnp.float32)

    # nn.BatchNorm2d(planes) default init: weight=1, bias=0.
    gamma = jnp.ones((C,), dtype=jnp.float32)
    beta = jnp.zeros((C,), dtype=jnp.float32)

    out = activation_forward(x, gamma, beta)
    out = jax.block_until_ready(out)

    ref = reference_forward(x, gamma, beta)
    assert out.shape == (N, C, H, W)
    assert jnp.allclose(out, ref, atol=2e-5, rtol=2e-5), "mismatch vs reference"

    # TODO(synk): nn.BatchNorm2d running_mean/running_var buffer updates are
    # module training-state bookkeeping, not part of the forward output tensor.

    print("KERNEL_OK")
</pallas_src>

<mosaic_0001>
module attributes {stable_mosaic.version = 11 : i64} {
  func.func @_fused_bn_relu_kernel(%arg0: i32, %arg1: memref<2x4x256xf32, #tpu.memory_space<vmem>>, %arg2: memref<1x4x1xf32, #tpu.memory_space<vmem>>, %arg3: memref<1x4x1xf32, #tpu.memory_space<vmem>>, %arg4: memref<2x4x256xf32, #tpu.memory_space<vmem>>) attributes {dimension_semantics = [#tpu.dimension_semantics<arbitrary>], iteration_bounds = array<i64: 1>, scalar_prefetch = 0 : i64, scratch_operands = 0 : i64, tpu.core_type = #tpu.core_type<tc>, window_params = [{pipeline_mode = #tpu.pipeline_mode<synchronous>, transform_indices = @transform_0, window_bounds = array<i64: 2, 4, 256>}, {pipeline_mode = #tpu.pipeline_mode<synchronous>, transform_indices = @transform_1, window_bounds = array<i64: 1, 4, 1>}, {pipeline_mode = #tpu.pipeline_mode<synchronous>, transform_indices = @transform_2, window_bounds = array<i64: 1, 4, 1>}, {pipeline_mode = #tpu.pipeline_mode<synchronous>, transform_indices = @transform_3, window_bounds = array<i64: 2, 4, 256>}]} {
    %c0 = arith.constant 0 : index
    %c0_0 = arith.constant 0 : index
    %c0_1 = arith.constant 0 : index
    %0 = vector.load %arg1[%c0, %c0_0, %c0_1] : memref<2x4x256xf32, #tpu.memory_space<vmem>>, vector<2x4x256xf32>
    %cst = arith.constant dense<0.000000e+00> : vector<2x4xf32>
    %1 = vector.multi_reduction <add>, %0, %cst [2] : vector<2x4x256xf32> to vector<2x4xf32>
    %2 = vector.shape_cast %1 : vector<2x4xf32> to vector<2x4x1xf32>
    %cst_2 = arith.constant dense<0.000000e+00> : vector<4x1xf32>
    %3 = vector.multi_reduction <add>, %2, %cst_2 [0] : vector<2x4x1xf32> to vector<4x1xf32>
    %4 = vector.shape_cast %3 : vector<4x1xf32> to vector<1x4x1xf32>
    %5 = arith.mulf %0, %0 : vector<2x4x256xf32>
    %cst_3 = arith.constant dense<0.000000e+00> : vector<2x4xf32>
    %6 = vector.multi_reduction <add>, %5, %cst_3 [2] : vector<2x4x256xf32> to vector<2x4xf32>
    %7 = vector.shape_cast %6 : vector<2x4xf32> to vector<2x4x1xf32>
    %cst_4 = arith.constant dense<0.000000e+00> : vector<4x1xf32>
    %8 = vector.multi_reduction <add>, %7, %cst_4 [0] : vector<2x4x1xf32> to vector<4x1xf32>
    %9 = vector.shape_cast %8 : vector<4x1xf32> to vector<1x4x1xf32>
    %cst_5 = arith.constant 5.120000e+02 : f32
    %10 = vector.broadcast %cst_5 : f32 to vector<1x4x1xf32>
    %11 = arith.divf %4, %10 : vector<1x4x1xf32>
    %cst_6 = arith.constant 5.120000e+02 : f32
    %12 = vector.broadcast %cst_6 : f32 to vector<1x4x1xf32>
    %13 = arith.divf %9, %12 : vector<1x4x1xf32>
    %14 = arith.mulf %11, %11 : vector<1x4x1xf32>
    %15 = arith.subf %13, %14 : vector<1x4x1xf32>
    %cst_7 = arith.constant 0.000000e+00 : f32
    %16 = vector.broadcast %cst_7 : f32 to vector<1x4x1xf32>
    %17 = arith.maximumf %15, %16 : vector<1x4x1xf32>
    %cst_8 = arith.constant 9.99999974E-6 : f32
    %18 = vector.broadcast %cst_8 : f32 to vector<1x4x1xf32>
    %19 = arith.addf %17, %18 : vector<1x4x1xf32>
    %20 = math.rsqrt %19 : vector<1x4x1xf32>
    %c0_9 = arith.constant 0 : index
    %c0_10 = arith.constant 0 : index
    %c0_11 = arith.constant 0 : index
    %21 = vector.load %arg2[%c0_9, %c0_10, %c0_11] : memref<1x4x1xf32, #tpu.memory_space<vmem>>, vector<1x4x1xf32>
    %22 = arith.mulf %21, %20 : vector<1x4x1xf32>
    %c0_12 = arith.constant 0 : index
    %c0_13 = arith.constant 0 : index
    %c0_14 = arith.constant 0 : index
    %23 = vector.load %arg3[%c0_12, %c0_13, %c0_14] : memref<1x4x1xf32, #tpu.memory_space<vmem>>, vector<1x4x1xf32>
    %24 = arith.mulf %11, %22 : vector<1x4x1xf32>
    %25 = arith.subf %23, %24 : vector<1x4x1xf32>
    %26 = vector.broadcast %22 : vector<1x4x1xf32> to vector<2x4x256xf32>
    %27 = arith.mulf %0, %26 : vector<2x4x256xf32>
    %28 = vector.broadcast %25 : vector<1x4x1xf32> to vector<2x4x256xf32>
    %29 = arith.addf %27, %28 : vector<2x4x256xf32>
    %cst_15 = arith.constant 0.000000e+00 : f32
    %30 = vector.broadcast %cst_15 : f32 to vector<2x4x256xf32>
    %31 = arith.maximumf %29, %30 : vector<2x4x256xf32>
    %c0_16 = arith.constant 0 : index
    %c0_17 = arith.constant 0 : index
    %c0_18 = arith.constant 0 : index
    %32 = vector.load %arg4[%c0_16, %c0_17, %c0_18] : memref<2x4x256xf32, #tpu.memory_space<vmem>>, vector<2x4x256xf32>
    tpu.vector_store %arg4[%c0_16, %c0_17, %c0_18], %31 {strides = array<i32>} : memref<2x4x256xf32, #tpu.memory_space<vmem>>, vector<2x4x256xf32>,
    return
  }
  func.func @transform_0(%arg0: i32) -> (i32, i32, i32) {
    %c0_i32 = arith.constant 0 : i32
    %c0_i32_0 = arith.constant 0 : i32
    %c0_i32_1 = arith.constant 0 : i32
    %c0_i32_2 = arith.constant 0 : i32
    return %c0_i32, %c0_i32_0, %c0_i32_1 : i32, i32, i32
  }
  func.func @transform_1(%arg0: i32) -> (i32, i32, i32) {
    %c0_i32 = arith.constant 0 : i32
    %c0_i32_0 = arith.constant 0 : i32
    %c0_i32_1 = arith.constant 0 : i32
    %c0_i32_2 = arith.constant 0 : i32
    return %c0_i32, %c0_i32_0, %c0_i32_1 : i32, i32, i32
  }
  func.func @transform_2(%arg0: i32) -> (i32, i32, i32) {
    %c0_i32 = arith.constant 0 : i32
    %c0_i32_0 = arith.constant 0 : i32
    %c0_i32_1 = arith.constant 0 : i32
    %c0_i32_2 = arith.constant 0 : i32
    return %c0_i32, %c0_i32_0, %c0_i32_1 : i32, i32, i32
  }
  func.func @transform_3(%arg0: i32) -> (i32, i32, i32) {
    %c0_i32 = arith.constant 0 : i32
    %c0_i32_0 = arith.constant 0 : i32
    %c0_i32_1 = arith.constant 0 : i32
    %c0_i32_2 = arith.constant 0 : i32
    return %c0_i32, %c0_i32_0, %c0_i32_1 : i32, i32, i32
  }
}

</mosaic_0001>

<bundles_post_ra>
// kernel: tpu_custom_call.1
= control target key start
LH: loop header
LB: loop body
LE: loop exit
PB: predicated region body
PF: predicated region fallthrough
CT: control target
= control target key end

     0   :  { %8 = vsyncpa [#allocation3], 0  ;;  %s295_s0 = inlined_call_operand.hbm [shape: f32[2,4,256], index: 0, kind: input, shape index: {}]   ;;  %s296_s1 = inlined_call_operand.vmem [shape: f32[1,4,1], index: 1, kind: input, shape index: {}]   ;;  %s297_s2 = inlined_call_operand.vmem [shape: f32[1,4,1], index: 2, kind: input, shape index: {}]   ;;  %s298_s3 = inlined_call_operand.hbm [shape: f32[2,4,256], index: 3, kind: output, shape index: {}]  }
   0x1   :  { %9 = vsyncpa [#allocation4], 0  ;;  %s14_s14 = sshll.u32 %s295_s0, 4  ;;  %s226_s15 = smov [#allocation2]   ;;  %s15_s14 = int_to_ptr.hbm [resolvable:$true] %s14_s14 }
   0x2   :  { %s16_s16 = sshll.u32 %s226_s15, 4  ;;  %s227_s17 = smov 128   ;;  %s17_s16 = int_to_ptr.vmem [resolvable:$true] %s16_s16 }
   0x3   :  { %s228_s18 = smov 8  }
   0x4   :  { %22 = dma.hbm_to_vmem [thread:$0]  %s15_s14, 256, %s17_s16, [#allocation3], %s227_s17, %s227_s17, %s228_s18  }
   0x5   :  { %222 = dma.done.wait [#allocation3], 256  }
   0x6   :  { %223 = vsyncadd [#allocation3], 4294967040  ;;  %v259_v0 = vld [vmem:[#allocation2] sm:$0xff]  ;;  %v261_v1 = vld [vmem:[#allocation2 + $0x8] sm:$0xff]  ;;  %vm46_vm0 = vcmask 1043456   ;;  %v229_v24 = vmov 512.0  }
   0x7   :  { %35 = vst [vmem:[#allocation1] ss:$2 sm:$0xff] %v259_v0  ;;  %v60_v2 = vmul.f32 %v259_v0, %v259_v0  ;;  %v61_v3 = vmul.f32 %v261_v1, %v261_v1  ;;  %170 = vrcp.f32 %v229_v24  ;;  %v230_v29 = vmov 0   ;;  %v111_v54 = vld [vmem:[%s296_s1] sm:$0xf]  ;;  %s232_s1 = smov [#allocation5]  }
   0x8   :  { %39 = vst [vmem:[#allocation1 + $0x10] ss:$2 sm:$0xff] %v261_v1  ;;  %168 = vset.pattern.permute.xlu2 %v230_v29  ;;  %169 = vset.pattern.permute.xlu0 %v230_v29  ;;  %v113_v58 = vld [vmem:[%s297_s2] sm:$0xf]  ;;  %v231_v60 = vmov 839922192  }
   0x9   :  { %v121_v61 = vunpack.c.l.s4 %v231_v60  ;;  %s146_s22 = sshll.u32 %s232_s1, 4  ;;  %s148_s2 = sshll.u32 %s298_s3, 4  ;;  %s147_s22 = int_to_ptr.vmem [resolvable:$true] %s146_s22  ;;  %s149_s2 = int_to_ptr.hbm [resolvable:$true] %s148_s2 }
   0xb   :  { %v122_v63 = vunpack.c.0.s8 %v121_v61 }
   0xd   :  { %v171_v25 = vpop.eup %170 }
   0xe   :  { %v36_v4 = vld.sshfl [vmem:[#allocation1] sm:$0xff pattern:$0x75316420]  ;;  %v37_v5 = vld.sshfl [vmem:[#allocation1 + $0x8] sm:$0xff pattern:$0x75316420]  ;;  %vm93_vm1 = vweird.f32 %v171_v25 }
   0xf   :  { %v47_v6 = vsel %vm46_vm0, %v36_v4, 0.0  ;;  %v48_v7 = vsel %vm46_vm0, %v37_v5, 0.0  ;;  %64 = vst [vmem:[#allocation1] ss:$2 sm:$0xff] %v60_v2  ;;  %v89_v26 = vmul.f32 512.0, %v171_v25 }
  0x10   :  { %v49_v8 = vadd.f32 %v48_v7, %v47_v6  ;;  %v40_v9 = vld.sshfl [vmem:[#allocation1 + $0x10] sm:$0xff pattern:$0x75316420]  ;;  %v41_v10 = vld.sshfl [vmem:[#allocation1 + $0x18] sm:$0xff pattern:$0x75316420] }
  0x11   :  { %68 = vst [vmem:[#allocation1 + $0x10] ss:$2 sm:$0xff] %v61_v3  ;;  %v52_v11 = vsel %vm46_vm0, %v40_v9, 0.0  ;;  %v53_v12 = vsel %vm46_vm0, %v41_v10, 0.0  ;;  %v90_v28 = vsub.f32 1.0, %v89_v26 }
  0x12   :  { %50 = vadd.xlane.f32.xlu0 %v49_v8  ;;  %v54_v15 = vadd.f32 %v53_v12, %v52_v11 }
  0x13   :  { %v91_v30 = vmul.f32 %v171_v25, %v90_v28 }
  0x15   :  { %v92_v33 = vadd.f32 %v171_v25, %v91_v30 }
  0x16   :  { %v65_v13 = vld.sshfl [vmem:[#allocation1] sm:$0xff pattern:$0x75316420]  ;;  %v66_v14 = vld.sshfl [vmem:[#allocation1 + $0x8] sm:$0xff pattern:$0x75316420] }
  0x17   :  { %v75_v16 = vsel %vm46_vm0, %v65_v13, 0.0  ;;  %v76_v17 = vsel %vm46_vm0, %v66_v14, 0.0  ;;  %v94_v37 = vsel %vm93_vm1, %v171_v25, %v92_v33 }
  0x18   :  { %v77_v18 = vadd.f32 %v76_v17, %v75_v16  ;;  %v69_v19 = vld.sshfl [vmem:[#allocation1 + $0x10] sm:$0xff pattern:$0x75316420]  ;;  %v70_v20 = vld.sshfl [vmem:[#allocation1 + $0x18] sm:$0xff pattern:$0x75316420] }
  0x19   :  { %v80_v21 = vsel %vm46_vm0, %v69_v19, 0.0  ;;  %v81_v22 = vsel %vm46_vm0, %v70_v20, 0.0 }
  0x1a   :  { %78 = vadd.xlane.f32.xlu1 %v77_v18  ;;  %55 = vadd.xlane.f32.xlu0 %v54_v15  ;;  %v82_v23 = vadd.f32 %v81_v22, %v80_v21 }
  0x22   :  { %83 = vadd.xlane.f32.xlu1 %v82_v23 }
  0x85   :  { %v51_v27 = vpop.xlane.xlu0 %50 }
  0x86   :  { %v57_v35 = vsel %vm46_vm0, %v51_v27, 0.0 }
  0x8d   :  { %v79_v31 = vpop.xlane.xlu1 %78  ;;  %v56_v32 = vpop.xlane.xlu0 %55 }
  0x8e   :  { %v58_v34 = vsel %vm46_vm0, %v56_v32, 0.0  ;;  %v85_v40 = vsel %vm46_vm0, %v79_v31, 0.0 }
  0x8f   :  { %v59_v36 = vadd.f32 %v58_v34, %v57_v35 }
  0x91   :  { %v95_v38 = vmul.f32 %v94_v37, %v59_v36 }
  0x93   :  { %v97_v43 = vmul.f32 %v95_v38, %v95_v38 }
  0x95   :  { %v84_v39 = vpop.xlane.xlu1 %83 }
  0x96   :  { %v86_v41 = vsel %vm46_vm0, %v84_v39, 0.0 }
  0x97   :  { %v87_v42 = vadd.f32 %v86_v41, %v85_v40 }
  0x99   :  { %v96_v44 = vmul.f32 %v94_v37, %v87_v42 }
  0x9b   :  { %v98_v45 = vsub.f32 %v96_v44, %v97_v43 }
  0x9d   :  { %v99_v46 = vmax.f32 %v98_v45, 0.0 }
  0x9f   :  { %v100_v47 = vadd.f32 1e-05, %v99_v46 }
  0xa1   :  { %172 = vrsqrt.f32 %v100_v47  ;;  %vm107_vm3 = vweird.f32 %v100_v47 }
  0xa7   :  { %v173_v48 = vpop.eup %172 }
  0xa8   :  { %v102_v49 = vmul.f32 %v173_v48, %v100_v47  ;;  %vm108_vm2 = vweird.f32 %v173_v48 }
  0xa9   :  { %vm109_vm4 = vmor %vm107_vm3, %vm108_vm2 }
  0xaa   :  { %v103_v50 = vmul.f32 %v173_v48, %v102_v49 }
  0xac   :  { %v104_v51 = vmul.f32 0.5, %v103_v50 }
  0xae   :  { %v105_v52 = vsub.f32 1.5, %v104_v51 }
  0xb0   :  { %v106_v53 = vmul.f32 %v173_v48, %v105_v52 }
  0xb2   :  { %v110_v55 = vsel %vm109_vm4, %v173_v48, %v106_v53 }
  0xb3   :  { %v112_v56 = vmul.f32 %v111_v54, %v110_v55 }
  0xb5   :  { %118 = vperm.xlu2 %168, %v112_v56   ;;  %v114_v57 = vmul.f32 %v112_v56, %v95_v38 }
  0xb7   :  { %v115_v59 = vsub.f32 %v113_v58, %v114_v57 }
  0xbd   :  { %129 = vperm.xlu2 %168, %v115_v59  }
 0x10f   :  { %v119_v62 = vpop.permute.xlu2 %118 }
 0x110   :  { %v123_v2 = vperm.slane %v119_v62, %v122_v63 }
 0x112   :  { %v125_v4 = vmul.f32 %v123_v2, %v259_v0  ;;  %v126_v5 = vmul.f32 %v123_v2, %v261_v1 }
 0x117   :  { %v130_v3 = vpop.permute.xlu2 %129 }
 0x118   :  { %v134_v6 = vperm.slane %v130_v3, %v122_v63 }
 0x11a   :  { %v136_v7 = vadd.f32 %v134_v6, %v125_v4  ;;  %v137_v8 = vadd.f32 %v134_v6, %v126_v5 }
 0x11c   :  { %v138_v9 = vmax.f32 %v136_v7, 0.0  ;;  %v139_v10 = vmax.f32 %v137_v8, 0.0 }
 0x11e   :  { %140 = vst [vmem:[#allocation5] sm:$0xff] %v138_v9 }
 0x11f   :  { %141 = vst [vmem:[#allocation5 + $0x8] sm:$0xff] %v139_v10 }
 0x120   :  { %154 = dma.vmem_to_hbm [thread:$0]  %s147_s22, 256, %s149_s2, [#allocation4], %s227_s17, %s227_s17, %s228_s18  }
 0x121   :  { %224 = dma.done.wait [#allocation4], 256  }
 0x122   :  { %225 = vsyncadd [#allocation4], 4294967040 }
 0x123   :  { %159 = vsyncpa [#allocation3], 1 }
 0x124   :  { %160 = vsyncpa [#allocation4], 1 }

</bundles_post_ra>
